<compile_context>
chip_gen: v5e
topology: v5e:2x2
jax: 0.10.0
libtpu: 0.0.40
codegen_flags: <defaults>
</compile_context>

<pallas_src>
import functools

import jax
import jax.numpy as jnp
from jax.experimental import pallas as pl
from jax.experimental.pallas import tpu as pltpu


def _round_up(v, m):
    return -(-v // m) * m


def _fff_kernel(x_ref, sum_w_ref, leaf_w_ref, o_ref, acc_ref, leaf_ref, *,
                depth, dout_pad, num_internal, leaves_per_chunk):
    """Grid = (batch_tiles, leaf_chunks); axis 1 is the accumulation axis."""
    j = pl.program_id(1)

    # ---- once per batch tile: tree walk + accumulator init ------------------
    @pl.when(j == 0)
    def _():
        x = x_ref[...]                                      # (TB, Din) f32
        tb = x.shape[0]
        if num_internal > 0:
            # Branch sums for every internal node in ONE skinny f32 matmul:
            #   sum_j (x @ W[n])_j == x @ W[n].sum(-1)  (up to FP reassoc.)
            branch = jnp.dot(x, sum_w_ref[...],
                             preferred_element_type=jnp.float32)   # (TB, n_int)
            go_right = (branch > 0.0).astype(jnp.int32)
            node = jnp.zeros((tb, 1), jnp.int32)
            for level in range(depth - 1):
                lo = 2 ** level - 1
                hi = 2 ** (level + 1) - 1          # exclusive; nodes this level
                if hi - lo == 1:                   # level 0: always node 0
                    d = go_right[:, 0:1]
                else:
                    d = jnp.zeros((tb, 1), jnp.int32)
                    for n in range(lo, hi):
                        d = d + jnp.where(node == n, go_right[:, n:n + 1], 0)
                node = 2 * node + 1 + d
            leaf_ref[...] = node - num_internal            # in [0, n_last)
        else:
            leaf_ref[...] = jnp.zeros_like(leaf_ref)
        acc_ref[...] = jnp.zeros_like(acc_ref)

    # ---- this chunk's candidate outputs: lane-dense (bf16-capable) matmul ---
    xq = x_ref[...].astype(leaf_w_ref.dtype)
    wide = jnp.dot(xq, leaf_w_ref[...],
                   preferred_element_type=jnp.float32)      # (TB, lpc*Dout_pad)

    leaf = leaf_ref[...]                                    # (TB, 1) int32
    base = j * leaves_per_chunk
    acc = acc_ref[...]
    for li in range(leaves_per_chunk):                      # small static unroll
        acc = acc + jnp.where(leaf == base + li,
                              wide[:, li * dout_pad:(li + 1) * dout_pad], 0.0)
    acc_ref[...] = acc

    # ---- once per batch tile: ReLU + lane-dense store ------------------------
    @pl.when(j == pl.num_programs(1) - 1)
    def _():
        o_ref[...] = jnp.maximum(acc_ref[...], 0.0).astype(o_ref.dtype)


def fast_feedforward_network(x, weights, depth, *, batch_tile=None,
                             leaves_per_chunk=None, leaf_dtype=jnp.bfloat16):
    """x: (B, Din) f32, weights: (2**depth - 1, Din, Dout) f32 -> (B, Dout)."""
    B, din = x.shape
    num_nodes, w_din, dout = weights.shape
    assert w_din == din
    assert num_nodes == 2 ** depth - 1

    num_internal = 2 ** (depth - 1) - 1        # nodes at levels 0..depth-2
    n_last = 2 ** (depth - 1)                  # nodes at level depth-1
    dout_pad = _round_up(dout, 128)            # lane-dense per-leaf stride

    # Batch tiling: >=2 grid steps so both v7x TensorCores get work; cap 256.
    if batch_tile is None:
        half = _round_up(-(-B // 2), 8)
        batch_tile = max(8, min(256, half))
    batch_tile = min(batch_tile, _round_up(B, 8))
    batch_tile = _round_up(batch_tile, 8)
    pad = (-B) % batch_tile
    xp = jnp.pad(x, ((0, pad), (0, 0))) if pad else x     # zero rows: ReLU(0)=0
    xp = xp.astype(jnp.float32)
    Bp = B + pad

    # Leaf chunking: ~2 MiB of weights and ~1 MiB of matmul result per step.
    leaf_itemsize = jnp.dtype(leaf_dtype).itemsize
    if leaves_per_chunk is None:
        max_cols = max(dout_pad,
                       min((2 << 20) // (din * leaf_itemsize),
                           (1 << 20) // (batch_tile * 4)))
        leaves_per_chunk = max(1, min(n_last, max_cols // dout_pad))
        leaves_per_chunk = 1 << (leaves_per_chunk.bit_length() - 1)  # pow2
    assert n_last % leaves_per_chunk == 0
    num_chunks = n_last // leaves_per_chunk
    chunk_cols = leaves_per_chunk * dout_pad

    # Wrapper-side weight preprocessing (plain XLA, done once).
    if num_internal > 0:
        sum_w = jnp.transpose(weights[:num_internal].sum(axis=-1))   # (Din, n_int)
        sum_w = sum_w.astype(jnp.float32)
    else:
        sum_w = jnp.zeros((din, 1), jnp.float32)                     # dummy
    leaf_w = weights[num_internal:]                                  # (n_last, Din, Dout)
    if dout_pad != dout:
        leaf_w = jnp.pad(leaf_w, ((0, 0), (0, 0), (0, dout_pad - dout)))
    leaf_w = jnp.transpose(leaf_w, (1, 0, 2)).reshape(din, n_last * dout_pad)
    leaf_w = leaf_w.astype(leaf_dtype)                               # bf16 by default

    kernel = functools.partial(_fff_kernel, depth=depth, dout_pad=dout_pad,
                               num_internal=num_internal,
                               leaves_per_chunk=leaves_per_chunk)

    # VMEM budget (double-buffered inputs/output + scratch + matmul result)
    # and advisory cost estimate.
    vmem_est = (4 * (2 * batch_tile * din + 2 * din * sum_w.shape[1]
                     + 3 * batch_tile * dout_pad
                     + batch_tile * (chunk_cols + 1))
                + 2 * din * chunk_cols * leaf_itemsize)
    vmem_limit = int(min(64 << 20, max(32 << 20, 2 * vmem_est)))
    n_btiles = Bp // batch_tile
    cost = pl.CostEstimate(
        flops=2 * Bp * din * (num_internal + n_last * dout_pad),
        transcendentals=0,
        bytes_accessed=(xp.size * 4 + sum_w.size * 4
                        + leaf_w.size * leaf_itemsize * n_btiles
                        + Bp * dout_pad * 4))

    out = pl.pallas_call(
        kernel,
        out_shape=jax.ShapeDtypeStruct((Bp, dout_pad), jnp.float32),
        grid=(n_btiles, num_chunks),
        in_specs=[
            pl.BlockSpec((batch_tile, din), lambda b, j: (b, 0)),
            pl.BlockSpec(sum_w.shape, lambda b, j: (0, 0)),       # full, constant
            pl.BlockSpec((din, chunk_cols), lambda b, j: (0, j)), # leaf chunk j
        ],
        out_specs=pl.BlockSpec((batch_tile, dout_pad), lambda b, j: (b, 0)),
        scratch_shapes=[
            pltpu.VMEM((batch_tile, dout_pad), jnp.float32),      # accumulator
            pltpu.VMEM((batch_tile, 1), jnp.int32),               # leaf ids
        ],
        compiler_params=pltpu.CompilerParams(
            dimension_semantics=("parallel", "arbitrary"),
            vmem_limit_bytes=vmem_limit),
        cost_estimate=cost,
    )(xp, sum_w, leaf_w)

    return out[:B, :dout]


def _reference(x, weights, depth):
    """Pure-JAX transliteration of the PyTorch forward (serial, per sample)."""
    num_nodes = weights.shape[0]
    rows = []
    for i in range(x.shape[0]):
        node = 0
        logit = None
        for _ in range(depth):
            logit = x[i] @ weights[node]
            direction = int(jnp.sum(logit) > 0)
            node = 2 * node + 1 + direction
            if node >= num_nodes:
                break
        rows.append(jnp.maximum(logit, 0.0))
    return jnp.stack(rows)


if __name__ == "__main__":
    # Small shapes consistent with the module (input_dim == output_dim is
    # required by the original PyTorch code).
    batch = 16
    input_dim = output_dim = 32
    depth = 3
    num_nodes = 2 ** depth - 1

    key = jax.random.PRNGKey(0)
    kx, kw = jax.random.split(key)
    x = jax.random.normal(kx, (batch, input_dim), dtype=jnp.float32)
    # Deterministic stand-in for nn.Parameter(torch.randn(input_dim, output_dim)).
    weights = jax.random.normal(kw, (num_nodes, input_dim, output_dim),
                                dtype=jnp.float32)

    ref = _reference(x, weights, depth)

    # 1) Default config: bf16 leaf matmul, auto leaf chunking, 2 batch tiles.
    out_bf16 = jax.block_until_ready(
        fast_feedforward_network(x, weights, depth))
    assert out_bf16.shape == (batch, output_dim)
    assert jnp.allclose(out_bf16, ref, rtol=5e-2, atol=5e-2), \
        "bf16 path mismatch vs reference"

    # 2) Full-f32 leaf matmul with forced multi-chunk accumulation
    #    (exercises the pl.when init/accumulate/finalize path).
    out_f32 = jax.block_until_ready(
        fast_feedforward_network(x, weights, depth, batch_tile=8,
                                 leaves_per_chunk=1,
                                 leaf_dtype=jnp.float32))
    assert out_f32.shape == (batch, output_dim)
    assert jnp.allclose(out_f32, ref, rtol=1e-4, atol=1e-4), \
        "f32 path mismatch vs reference"

    print("KERNEL_OK")
</pallas_src>

<mosaic_0001>
module attributes {stable_mosaic.version = 11 : i64} {
  func.func @_fff_kernel(%arg0: i32, %arg1: i32, %arg2: memref<8x32xf32, #tpu.memory_space<vmem>>, %arg3: memref<32x3xf32, #tpu.memory_space<vmem>>, %arg4: memref<32x512xbf16, #tpu.memory_space<vmem>>, %arg5: memref<8x128xf32, #tpu.memory_space<vmem>>, %arg6: memref<8x128xf32, #tpu.memory_space<vmem>>, %arg7: memref<8x1xi32, #tpu.memory_space<vmem>>) attributes {dimension_semantics = [#tpu.dimension_semantics<parallel>, #tpu.dimension_semantics<arbitrary>], iteration_bounds = array<i64: 2, 1>, scalar_prefetch = 0 : i64, scratch_operands = 2 : i64, tpu.core_type = #tpu.core_type<tc>, window_params = [{transform_indices = @transform_0, window_bounds = array<i64: 8, 32>}, {pipeline_mode = #tpu.pipeline_mode<synchronous>, transform_indices = @transform_1, window_bounds = array<i64: 32, 3>}, {transform_indices = @transform_2, window_bounds = array<i64: 32, 512>}, {transform_indices = @transform_3, window_bounds = array<i64: 8, 128>}]} {
    %c0_i32 = arith.constant 0 : i32
    %0 = arith.cmpi eq, %arg1, %c0_i32 : i32
    %1 = arith.extui %0 : i1 to i32
    %c0_i32_0 = arith.constant 0 : i32
    %2 = arith.cmpi ne, %1, %c0_i32_0 : i32
    scf.if %2 {
      %c0_17 = arith.constant 0 : index
      %c0_18 = arith.constant 0 : index
      %50 = vector.load %arg2[%c0_17, %c0_18] : memref<8x32xf32, #tpu.memory_space<vmem>>, vector<8x32xf32>
      %c0_19 = arith.constant 0 : index
      %c0_20 = arith.constant 0 : index
      %51 = vector.load %arg3[%c0_19, %c0_20] : memref<32x3xf32, #tpu.memory_space<vmem>>, vector<32x3xf32>
      %cst_21 = arith.constant dense<0.000000e+00> : vector<8x3xf32>
      %52 = tpu.matmul %50, %51, %cst_21 {dimension_numbers = #tpu.dot_dimension_numbers<[1], [0], [0], [1], [0, 0, 1, 1], [], []>} : vector<8x32xf32>, vector<32x3xf32>, vector<8x3xf32> -> vector<8x3xf32>
      %cst_22 = arith.constant 0.000000e+00 : f32
      %53 = vector.broadcast %cst_22 : f32 to vector<8x3xf32>
      %54 = arith.cmpf ogt, %52, %53 : vector<8x3xf32>
      %55 = arith.extui %54 : vector<8x3xi1> to vector<8x3xi32>
      %c0_i32_23 = arith.constant 0 : i32
      %56 = vector.broadcast %c0_i32_23 : i32 to vector<8x1xi32>
      %57 = vector.extract_strided_slice %55 {offsets = [0, 0], sizes = [8, 1], strides = [1, 1]} : vector<8x3xi32> to vector<8x1xi32>
      %c2_i32_24 = arith.constant 2 : i32
      %58 = vector.broadcast %c2_i32_24 : i32 to vector<8x1xi32>
      %59 = arith.muli %58, %56 : vector<8x1xi32>
      %c1_i32_25 = arith.constant 1 : i32
      %60 = vector.broadcast %c1_i32_25 : i32 to vector<8x1xi32>
      %61 = arith.addi %59, %60 : vector<8x1xi32>
      %62 = arith.addi %61, %57 : vector<8x1xi32>
      %c0_i32_26 = arith.constant 0 : i32
      %63 = vector.broadcast %c0_i32_26 : i32 to vector<8x1xi32>
      %c1_i32_27 = arith.constant 1 : i32
      %64 = vector.broadcast %c1_i32_27 : i32 to vector<8x1xi32>
      %65 = arith.cmpi eq, %62, %64 : vector<8x1xi32>
      %66 = vector.extract_strided_slice %55 {offsets = [0, 1], sizes = [8, 1], strides = [1, 1]} : vector<8x3xi32> to vector<8x1xi32>
      %c0_i32_28 = arith.constant 0 : i32
      %67 = vector.broadcast %c0_i32_28 : i32 to vector<8x1xi32>
      %68 = arith.select %65, %66, %67 : vector<8x1xi1>, vector<8x1xi32>
      %69 = arith.addi %63, %68 : vector<8x1xi32>
      %c2_i32_29 = arith.constant 2 : i32
      %70 = vector.broadcast %c2_i32_29 : i32 to vector<8x1xi32>
      %71 = arith.cmpi eq, %62, %70 : vector<8x1xi32>
      %72 = vector.extract_strided_slice %55 {offsets = [0, 2], sizes = [8, 1], strides = [1, 1]} : vector<8x3xi32> to vector<8x1xi32>
      %c0_i32_30 = arith.constant 0 : i32
      %73 = vector.broadcast %c0_i32_30 : i32 to vector<8x1xi32>
      %74 = arith.select %71, %72, %73 : vector<8x1xi1>, vector<8x1xi32>
      %75 = arith.addi %69, %74 : vector<8x1xi32>
      %c2_i32_31 = arith.constant 2 : i32
      %76 = vector.broadcast %c2_i32_31 : i32 to vector<8x1xi32>
      %77 = arith.muli %76, %62 : vector<8x1xi32>
      %c1_i32_32 = arith.constant 1 : i32
      %78 = vector.broadcast %c1_i32_32 : i32 to vector<8x1xi32>
      %79 = arith.addi %77, %78 : vector<8x1xi32>
      %80 = arith.addi %79, %75 : vector<8x1xi32>
      %c3_i32_33 = arith.constant 3 : i32
      %81 = vector.broadcast %c3_i32_33 : i32 to vector<8x1xi32>
      %82 = arith.subi %80, %81 : vector<8x1xi32>
      %c0_34 = arith.constant 0 : index
      %c0_35 = arith.constant 0 : index
      %83 = vector.load %arg7[%c0_34, %c0_35] : memref<8x1xi32, #tpu.memory_space<vmem>>, vector<8x1xi32>
      tpu.vector_store %arg7[%c0_34, %c0_35], %82 {strides = array<i32>} : memref<8x1xi32, #tpu.memory_space<vmem>>, vector<8x1xi32>,
      %cst_36 = arith.constant 0.000000e+00 : f32
      %84 = vector.broadcast %cst_36 : f32 to vector<8x128xf32>
      %c0_37 = arith.constant 0 : index
      %c0_38 = arith.constant 0 : index
      %85 = vector.load %arg6[%c0_37, %c0_38] : memref<8x128xf32, #tpu.memory_space<vmem>>, vector<8x128xf32>
      tpu.vector_store %arg6[%c0_37, %c0_38], %84 {strides = array<i32>} : memref<8x128xf32, #tpu.memory_space<vmem>>, vector<8x128xf32>,
    } else {
    }
    %c0 = arith.constant 0 : index
    %c0_1 = arith.constant 0 : index
    %3 = vector.load %arg2[%c0, %c0_1] : memref<8x32xf32, #tpu.memory_space<vmem>>, vector<8x32xf32>
    %4 = arith.truncf %3 : vector<8x32xf32> to vector<8x32xbf16>
    %c0_2 = arith.constant 0 : index
    %c0_3 = arith.constant 0 : index
    %5 = vector.load %arg4[%c0_2, %c0_3] : memref<32x512xbf16, #tpu.memory_space<vmem>>, vector<32x512xbf16>
    %cst = arith.constant dense<0.000000e+00> : vector<8x512xf32>
    %6 = tpu.matmul %4, %5, %cst {dimension_numbers = #tpu.dot_dimension_numbers<[1], [0], [0], [1], [0, 0, 1, 1], [], []>} : vector<8x32xbf16>, vector<32x512xbf16>, vector<8x512xf32> -> vector<8x512xf32>
    %c0_4 = arith.constant 0 : index
    %c0_5 = arith.constant 0 : index
    %7 = vector.load %arg7[%c0_4, %c0_5] : memref<8x1xi32, #tpu.memory_space<vmem>>, vector<8x1xi32>
    %c4_i32 = arith.constant 4 : i32
    %8 = arith.muli %arg1, %c4_i32 : i32
    %c0_6 = arith.constant 0 : index
    %c0_7 = arith.constant 0 : index
    %9 = vector.load %arg6[%c0_6, %c0_7] : memref<8x128xf32, #tpu.memory_space<vmem>>, vector<8x128xf32>
    %c0_i32_8 = arith.constant 0 : i32
    %10 = arith.addi %8, %c0_i32_8 : i32
    %11 = vector.broadcast %10 : i32 to vector<8x1xi32>
    %12 = arith.cmpi eq, %7, %11 : vector<8x1xi32>
    %13 = vector.extract_strided_slice %6 {offsets = [0, 0], sizes = [8, 128], strides = [1, 1]} : vector<8x512xf32> to vector<8x128xf32>
    %cst_9 = arith.constant 0.000000e+00 : f32
    %14 = vector.shape_cast %12 : vector<8x1xi1> to vector<8x1xi1>
    %15 = vector.broadcast %14 : vector<8x1xi1> to vector<8x128xi1>
    %16 = vector.broadcast %cst_9 : f32 to vector<8x128xf32>
    %17 = arith.select %15, %13, %16 : vector<8x128xi1>, vector<8x128xf32>
    %18 = arith.addf %9, %17 : vector<8x128xf32>
    %c1_i32 = arith.constant 1 : i32
    %19 = arith.addi %8, %c1_i32 : i32
    %20 = vector.broadcast %19 : i32 to vector<8x1xi32>
    %21 = arith.cmpi eq, %7, %20 : vector<8x1xi32>
    %22 = vector.extract_strided_slice %6 {offsets = [0, 128], sizes = [8, 128], strides = [1, 1]} : vector<8x512xf32> to vector<8x128xf32>
    %cst_10 = arith.constant 0.000000e+00 : f32
    %23 = vector.shape_cast %21 : vector<8x1xi1> to vector<8x1xi1>
    %24 = vector.broadcast %23 : vector<8x1xi1> to vector<8x128xi1>
    %25 = vector.broadcast %cst_10 : f32 to vector<8x128xf32>
    %26 = arith.select %24, %22, %25 : vector<8x128xi1>, vector<8x128xf32>
    %27 = arith.addf %18, %26 : vector<8x128xf32>
    %c2_i32 = arith.constant 2 : i32
    %28 = arith.addi %8, %c2_i32 : i32
    %29 = vector.broadcast %28 : i32 to vector<8x1xi32>
    %30 = arith.cmpi eq, %7, %29 : vector<8x1xi32>
    %31 = vector.extract_strided_slice %6 {offsets = [0, 256], sizes = [8, 128], strides = [1, 1]} : vector<8x512xf32> to vector<8x128xf32>
    %cst_11 = arith.constant 0.000000e+00 : f32
    %32 = vector.shape_cast %30 : vector<8x1xi1> to vector<8x1xi1>
    %33 = vector.broadcast %32 : vector<8x1xi1> to vector<8x128xi1>
    %34 = vector.broadcast %cst_11 : f32 to vector<8x128xf32>
    %35 = arith.select %33, %31, %34 : vector<8x128xi1>, vector<8x128xf32>
    %36 = arith.addf %27, %35 : vector<8x128xf32>
    %c3_i32 = arith.constant 3 : i32
    %37 = arith.addi %8, %c3_i32 : i32
    %38 = vector.broadcast %37 : i32 to vector<8x1xi32>
    %39 = arith.cmpi eq, %7, %38 : vector<8x1xi32>
    %40 = vector.extract_strided_slice %6 {offsets = [0, 384], sizes = [8, 128], strides = [1, 1]} : vector<8x512xf32> to vector<8x128xf32>
    %cst_12 = arith.constant 0.000000e+00 : f32
    %41 = vector.shape_cast %39 : vector<8x1xi1> to vector<8x1xi1>
    %42 = vector.broadcast %41 : vector<8x1xi1> to vector<8x128xi1>
    %43 = vector.broadcast %cst_12 : f32 to vector<8x128xf32>
    %44 = arith.select %42, %40, %43 : vector<8x128xi1>, vector<8x128xf32>
    %45 = arith.addf %36, %44 : vector<8x128xf32>
    %c0_13 = arith.constant 0 : index
    %c0_14 = arith.constant 0 : index
    %46 = vector.load %arg6[%c0_13, %c0_14] : memref<8x128xf32, #tpu.memory_space<vmem>>, vector<8x128xf32>
    tpu.vector_store %arg6[%c0_13, %c0_14], %45 {strides = array<i32>} : memref<8x128xf32, #tpu.memory_space<vmem>>, vector<8x128xf32>,
    %c0_i32_15 = arith.constant 0 : i32
    %47 = arith.cmpi eq, %arg1, %c0_i32_15 : i32
    %48 = arith.extui %47 : i1 to i32
    %c0_i32_16 = arith.constant 0 : i32
    %49 = arith.cmpi ne, %48, %c0_i32_16 : i32
    scf.if %49 {
      %c0_17 = arith.constant 0 : index
      %c0_18 = arith.constant 0 : index
      %50 = vector.load %arg6[%c0_17, %c0_18] : memref<8x128xf32, #tpu.memory_space<vmem>>, vector<8x128xf32>
      %cst_19 = arith.constant 0.000000e+00 : f32
      %51 = vector.broadcast %cst_19 : f32 to vector<8x128xf32>
      %52 = arith.maximumf %50, %51 : vector<8x128xf32>
      %c0_20 = arith.constant 0 : index
      %c0_21 = arith.constant 0 : index
      %53 = vector.load %arg5[%c0_20, %c0_21] : memref<8x128xf32, #tpu.memory_space<vmem>>, vector<8x128xf32>
      tpu.vector_store %arg5[%c0_20, %c0_21], %52 {strides = array<i32>} : memref<8x128xf32, #tpu.memory_space<vmem>>, vector<8x128xf32>,
    } else {
    }
    return
  }
  func.func @transform_0(%arg0: i32, %arg1: i32) -> (i32, i32) {
    %c0_i32 = arith.constant 0 : i32
    %c0_i32_0 = arith.constant 0 : i32
    return %arg0, %c0_i32 : i32, i32
  }
  func.func @transform_1(%arg0: i32, %arg1: i32) -> (i32, i32) {
    %c0_i32 = arith.constant 0 : i32
    %c0_i32_0 = arith.constant 0 : i32
    %c0_i32_1 = arith.constant 0 : i32
    return %c0_i32, %c0_i32_0 : i32, i32
  }
  func.func @transform_2(%arg0: i32, %arg1: i32) -> (i32, i32) {
    %c0_i32 = arith.constant 0 : i32
    %c0_i32_0 = arith.constant 0 : i32
    return %c0_i32, %arg1 : i32, i32
  }
  func.func @transform_3(%arg0: i32, %arg1: i32) -> (i32, i32) {
    %c0_i32 = arith.constant 0 : i32
    %c0_i32_0 = arith.constant 0 : i32
    return %arg0, %c0_i32 : i32, i32
  }
}

</mosaic_0001>

<bundles_post_ra>
// kernel: tpu_custom_call.1
= control target key start
LH: loop header
LB: loop body
LE: loop exit
PB: predicated region body
PF: predicated region fallthrough
CT: control target
= control target key end

     0   :  { %8 = vsyncpa [#allocation5], 0  ;;  %s907_s0 = inlined_call_operand.vmem [shape: f32[16,32], index: 0, kind: input, shape index: {}]   ;;  %s908_s1 = inlined_call_operand.vmem [shape: f32[32,3], index: 1, kind: input, shape index: {}]   ;;  %s909_s2 = inlined_call_operand.hbm [shape: bf16[32,512], index: 2, kind: input, shape index: {}]   ;;  %s910_s3 = inlined_call_operand.hbm [shape: f32[16,128], index: 3, kind: output, shape index: {}]  }
   0x1   :  { %9 = vsyncpa [#allocation6], 0 }
   0x2   :  { %11 = vsyncpa [#allocation6 + $0x1], 0  ;;  %s782_s12 = smov 0   ;;  %s784_s13 = smov 0  }
   0x3   :  { %s786_s14 = smov 0   ;;  %s788_s15 = smov 0  }
   0x4   :  { %s790_s16 = smov 0   ;;  %s792_s17 = smov 0  }
   0x5 LB: > { %s509_s18 = sadd.s32 4294967295, %s754_s17   ;;  %s510_s19 = sadd.s32 4294967294, %s754_s17   ;;  %s754_s17 = sphi %s792_s17, %s17_s17   ;;  %s750_s16 = sphi %s790_s16, %s917_s16   ;;  %s746_s15 = sphi %s788_s15, %s916_s15   ;;  %s742_s14 = sphi %s786_s14, %s915_s14   ;;  %s738_s13 = sphi %s784_s13, %s914_s13   ;;  %s734_s12 = sphi %s782_s12, %s913_s12  }
   0x6   : > { %s29_s20 = sadd.s32 1, %s750_s16  ;;  %s109_s21 = sadd.s32 1, %s742_s14 }
   0x7   : > { %p31_p0 = scmp.ge.s32.totalorder %s29_s20, 2  ;;  %p119_p1 = scmp.ne.s32.totalorder %s742_s14, %s738_s13 }
   0x8   : > { %p120_p2 = scmp.eq.s32.totalorder %s509_s18, 1  ;;  %p125_p3 = scmp.ne.s32.totalorder %s738_s13, %s734_s12 }
   0x9   : > { %s919_s20 = smov (%p31_p0, %s29_s20), 0  ;;  %p126_p5 = scmp.eq.s32.totalorder %s510_s19, 1 }
   0xa   : > { %p822_p4 = por %p120_p2, %p119_p1  ;;  %s106_s23 = ssub.s32 %s750_s16, %s919_s20 }
   0xb   : > { %p511_p6 = scmp.ge.s32.totalorder %s754_s17, 1  ;;  %p107_p7 = scmp.eq.s32.totalorder %s106_s23, 0 }
   0xc   : > { %p829_p8 = por %p126_p5, %p125_p3  ;;  %p133_p9 = scmp.lt.s32.totalorder %s754_s17, 3 }
   0xd   : > { %s835_s25 = scalar_select %p107_p7, %s742_s14, %s109_s21  }
   0xe   : > { %p134_p10 = pnand %p511_p6, %p133_p9  ;;  %p582_p11 = scmp.eq.s32.totalorder %s509_s18, 0 }
   0xf   : > { %s150_s28 = sshll.u32 %s909_s2, 4  ;;  %s756_s29 = smov [#allocation4]   ;;  %s151_s28 = int_to_ptr.hbm [resolvable:$true] %s150_s28 }
  0x10   : > { %p574_p12 = pneg %p134_p10  ;;  %s152_s30 = sshll.u32 %s756_s29, 4  ;;  %s153_s30 = int_to_ptr.vmem [resolvable:$true] %s152_s30 }
  0x11   : > { %s757_s4 = smov 256   ;;  %s758_s5 = smov 16  }
  0x12   : > { %p575_p13 = pnand %p582_p11, %p574_p12  ;;  %175 = sbr.rel (%p134_p10) target bundleno = 436 (0x1b4), region = 32 }
  0x14   : > { %577 = dma.hbm_to_vmem [thread:$0]  (!%p575_p13), %s151_s28, 1024, %s153_s30, [#allocation5], %s757_s4, %s757_s4, %s758_s5  }
  0x17   : > { %725 = dma.done.wait (%p582_p11), [#allocation5], 1024  }
  0x18   : > { %727 = vsyncadd (%p582_p11), [#allocation5], 4294966272  ;;  %p199_p0 = scmp.lt.s32.totalorder %s746_s15, 1  ;;  %v213_v0 = vld [vmem:[%s908_s1 + $0x18] sm:$0xff]  ;;  %v212_v1 = vld [vmem:[%s908_s1 + $0x10] sm:$0xff]  ;;  %vm214_vm0 = vcmask 261120  }
  0x19   : > { %230 = vmatpush.msra.mxu0 %v213_v0  ;;  %v211_v2 = vld [vmem:[%s908_s1 + $0x8] sm:$0xff]  ;;  %v210_v3 = vld [vmem:[%s908_s1] sm:$0xff]  ;;  %v759_v5 = vmov 0   ;;  %v546_v6 = vld [vmem:[#allocation4 + $0x28] sm:$0xf]  ;;  %s760_s29 = smov 127  }
  0x1a   : > { %s200_s6 = scalar_select %p199_p0, %s746_s15, 1  ;;  %640 = vset.pattern.permute.xlu2 %v759_v5  ;;  %639 = vset.pattern.permute.xlu1 %v759_v5  ;;  %v567_v7 = vld [vmem:[#allocation4 + $0x34] sm:$0xf0]  ;;  %v530_v8 = vld [vmem:[#allocation4 + $0x8] sm:$0xf]  ;;  %vm254_vm4 = vcmask 7168  }
  0x1b   : > { %231 = vmatpush.msra.mxu0 %v212_v1  ;;  %641 = vset.pattern.permute.xlu0 %v759_v5  ;;  %v547_v9 = vor.u32 %v567_v7, %v546_v6  ;;  %v563_v10 = vld [vmem:[#allocation4 + $0x14] sm:$0xf0]  ;;  %v565_v11 = vld [vmem:[#allocation4 + $0x2c] sm:$0xf]  ;;  %v548_v12 = vld [vmem:[#allocation4 + $0x38] sm:$0xf0] }
  0x1c   : > { %s517_s7 = sshll.u32 %s200_s6, 3  ;;  %v551_v13 = vor.u32 %v565_v11, %v548_v12  ;;  %v561_v14 = vld [vmem:[#allocation4 + $0xc] sm:$0xf]  ;;  %v532_v15 = vld [vmem:[#allocation4 + $0x18] sm:$0xf0]  ;;  %v531_v16 = vor.u32 %v563_v10, %v530_v8  ;;  %s761_s30 = smov 126  }
  0x1d   : > { %s202_s26 = scalar_lea.vmem %s907_s0, %s517_s7  ;;  %232 = vmatpush.msra.mxu0 %v211_v2  ;;  %343 = vmatpush.bf16.msra.mxu3 %v547_v9  ;;  %v535_v17 = vor.u32 %v561_v14, %v532_v15  ;;  %v564_v21 = vld [vmem:[#allocation4 + $0x24] sm:$0xf]  ;;  %v540_v22 = vld [vmem:[#allocation4 + $0x30] sm:$0xf0]  ;;  %v538_v27 = vld [vmem:[#allocation4 + $0x20] sm:$0xf] }
  0x1e   : > { %v209_v4 = vld [vmem:[%s202_s26] sm:$0xff]  ;;  %v543_v23 = vor.u32 %v564_v21, %v540_v22  ;;  %v560_v24 = vld [vmem:[#allocation4 + $0x4] sm:$0xf]  ;;  %v524_v25 = vld [vmem:[#allocation4 + $0x10] sm:$0xf0]  ;;  %s196_s4 = sand.u32 1, %s738_s13  }
  0x1f   : > { %233 = vmatpush.msra.mxu0 %v210_v3  ;;  %v258_v18 = vpack.c.bf16 %v209_v4, %v209_v4  ;;  %v527_v26 = vor.u32 %v560_v24, %v524_v25  ;;  %v566_v28 = vld [vmem:[#allocation4 + $0x2c] sm:$0xf0]  ;;  %v522_v30 = vld [vmem:[#allocation4] sm:$0xf]  ;;  %s516_s5 = sshll.u32 %s196_s4, 3  ;;  %s557_s6 = sshll.u32 %s746_s15, 3 }
  0x20   : > { %518 = vmatmul.msk.f32.vlgmr.msra.gmra.mxu0 %vm214_vm0, %v209_v4  ;;  %330 = vmatpush.bf16.msra.mxu2 %v543_v23  ;;  %v539_v29 = vor.u32 %v566_v28, %v538_v27  ;;  %v562_v31 = vld [vmem:[#allocation4 + $0xc] sm:$0xf0]  ;;  %s423_s9 = scalar_lea.hbm %s910_s3, %s557_s6  ;;  %s198_s10 = scalar_lea.vmem [#allocation7], %s516_s5 }
  0x21   : > { %356 = vmatpush.bf16.msrb.mxu0 %v551_v13  ;;  %344 = vmatpush.bf16.msra.mxu3 %v531_v16  ;;  %v523_v32 = vor.u32 %v562_v31, %v522_v30  ;;  %s425_s11 = sshll.u32 %s198_s10, 4  ;;  %s427_s18 = sshll.u32 %s423_s9, 4  ;;  %s426_s11 = int_to_ptr.vmem [resolvable:$true] %s425_s11  ;;  %s428_s18 = int_to_ptr.hbm [resolvable:$true] %s427_s18 }
  0x22   : > { %317 = vmatpush.bf16.msra.mxu1 %v539_v29  ;;  %s413_s15 = scalar_lea.sflag [#allocation6], %s196_s4  ;;  %s686_s19 = sshra.s32 %s428_s18, 4  ;;  %s687_s19 = int_to_ptr.hbm [resolvable:$true] %s686_s19 }
  0x23   : > { %s688_s21 = scalar_lea.hbm %s687_s19, 8  ;;  %s692_s27 = scalar_lea.hbm %s910_s3, 16 }
  0x24   : > { %554 = vmatmul.msk.bf16.vlgmr.msra.gmra.mxu3 %vm214_vm0, %v258_v18  ;;  %331 = vmatpush.bf16.msra.mxu2 %v527_v26  ;;  %p689_p1 = scmp.ne.s32.totalorder %s687_s19, %s688_s21  ;;  %p693_p5 = scmp.lt.s32.totalorder %s687_s19, %s910_s3 }
  0x25   : > { %357 = vmatpush.bf16.msrb.mxu0 %v535_v17  ;;  %p694_p6 = scmp.lt.s32.totalorder %s692_s27, %s688_s21 }
  0x26   : > { %318 = vmatpush.bf16.msra.mxu1 %v523_v32  ;;  %p690_p2 = pnand %p689_p1, %p822_p4 }
  0x27   : > { %553 = vmatmul.msk.bf16.vlgmr.msra.gmra.mxu2 %vm214_vm0, %v258_v18  ;;  %p695_p7 = por %p694_p6, %p693_p5 }
  0x28   : > { %555 = vmatmul.msk.bf16.vlgmr.msrb.gmra.mxu0 %vm214_vm0, %v258_v18  ;;  %p691_p3 = pneg %p690_p2 }
  0x29   : > { %552 = vmatmul.msk.bf16.vlgmr.msra.gmra.mxu1 %vm214_vm0, %v258_v18 }
  0x2a   : > { %p696_p9 = pnand %p695_p7, %p691_p3 }
  0x9d   : > { %v235_v19 = vpop.f32.mrf.mxu0 }
  0x9e   : > { %vm238_vm1 = vcmp.gt.f32.partialorder %v235_v19, 0.0 }
  0x9f   : > { %v239_v20 = vsel %vm238_vm1, 1, %v759_v5 }
  0xa0   : > { %242 = vrot.lane.b32.xlu0 %v239_v20, %s760_s29  ;;  %v240_v34 = vadd.s32 1, %v239_v20 }
  0xa2   : > { %v250_v35 = vmul.u32 2, %v240_v34  ;;  %vm241_vm2 = vcmp.eq.s32.totalorder %v240_v34, 1  ;;  %vm245_vm3 = vcmp.eq.s32.totalorder %v240_v34, 2 }
  0xa4   : > { %v251_v40 = vadd.s32 1, %v250_v35 }
  0xa5   : > { %v359_v49 = vpop.f32.mrf.mxu0 }
  0xa6   : > { %v320_v52 = vpop.f32.mrf.mxu1 }
  0xa7   : > { %v346_v48 = vpop.f32.mrf.mxu3 }
  0xa8   : > { %246 = vrot.lane.b32.xlu0 %v239_v20, %s761_s30 }
  0xaa   : > { %v333_v53 = vpop.f32.mrf.mxu2 }
  0xad   : > { %v361_v51 = vpop.f32.mrf.mxu0 }
  0xae   : > { %v322_v54 = vpop.f32.mrf.mxu1 }
  0xaf   : > { %v348_v50 = vpop.f32.mrf.mxu3 }
  0xb2   : > { %v335_v55 = vpop.f32.mrf.mxu2 }
 0x112   : > { %v243_v33 = vpop.permute.xlu0 %242 }
 0x113   : > { %v244_v37 = vsel %vm241_vm2, %v243_v33, 0 }
 0x11a   : > { %v247_v36 = vpop.permute.xlu0 %246 }
 0x11b   : > { %v248_v38 = vsel %vm245_vm3, %v247_v36, 0 }
 0x11c   : > { %v249_v39 = vadd.s32 %v248_v38, %v244_v37 }
 0x11e   : > { %v252_v41 = vadd.s32 %v251_v40, %v249_v39 }
 0x120   : > { %v519_v42 = vadd.s32 4294967293, %v252_v41 }
 0x122   : > { %255 = vst.msk [vmem:[#allocation3] sm:$0xff] %vm254_vm4, %v519_v42 }
 0x129   : > { %v363_v43 = vld [vmem:[#allocation3] sm:$0xff] }
 0x12a   : > { %vm387_vm5 = vcmp.eq.s32.totalorder %v363_v43, 2  ;;  %vm367_vm6 = vcmp.eq.s32.totalorder %v363_v43, 0  ;;  %vm397_vm7 = vcmp.eq.s32.totalorder %v363_v43, 3  ;;  %vm377_vm8 = vcmp.eq.s32.totalorder %v363_v43, 1 }
 0x12b   : > { %v388_v44 = vsel %vm387_vm5, 1, %v759_v5  ;;  %v368_v45 = vsel %vm367_vm6, 1, %v759_v5  ;;  %v398_v46 = vsel %vm397_vm7, 1, %v759_v5  ;;  %v378_v47 = vsel %vm377_vm8, 1, %v759_v5 }
 0x12c   : > { %390 = vperm.xlu2 %640, %v388_v44   ;;  %370 = vperm.xlu1 %639, %v368_v45  }
 0x134   : > { %400 = vperm.xlu2 %640, %v398_v46   ;;  %380 = vperm.xlu1 %639, %v378_v47  }
 0x186   : > { %v391_v56 = vpop.permute.xlu2 %390 }
 0x187   : > { %vm392_vm10 = vcmp.eq.s32.totalorder %v391_v56, 1 }
 0x188   : > { %v393_v63 = vsel %vm392_vm10, %v346_v48, 0.0 }
 0x18e   : > { %v401_v58 = vpop.permute.xlu2 %400 }
 0x18f   : > { %vm402_vm12 = vcmp.eq.s32.totalorder %v401_v58, 1 }
 0x190   : > { %v403_v1 = vsel %vm402_vm12, %v359_v49, 0.0 }
 0x19e   : > { %v371_v57 = vpop.permute.xlu1 %370 }
 0x19f   : > { %vm372_vm9 = vcmp.eq.s32.totalorder %v371_v57, 1 }
 0x1a0   : > { %v373_v60 = vsel %vm372_vm9, %v320_v52, 0.0 }
 0x1a6   : > { %v381_v59 = vpop.permute.xlu1 %380 }
 0x1a7   : > { %vm382_vm11 = vcmp.eq.s32.totalorder %v381_v59, 1 }
 0x1a8   : > { %v383_v61 = vsel %vm382_vm11, %v333_v53, 0.0 }
 0x1a9   : > { %v384_v62 = vadd.f32 %v383_v61, %v373_v60 }
 0x1ab   : > { %v394_v0 = vadd.f32 %v393_v63, %v384_v62 }
 0x1ad   : > { %v404_v2 = vadd.f32 %v403_v1, %v394_v0 }
 0x1af   : > { %v410_v3 = vmax.f32 %v404_v2, 0.0 }
 0x1b1   : > { %411 = vst [vmem:[%s198_s10] sm:$0xff] %v410_v3 }
 0x1b2   : > { %699 = shalt.err (!%p696_p9)
}
 0x1b3   : > { %572 = dma.vmem_to_hbm [thread:$0]  (%p822_p4), %s426_s11, 128, %s428_s18, %s413_s15  }
 0x1b4 PF: > { %p584_p10 = scmp.ge.s32.totalorder %s754_s17, 2  ;;  %s439_s30 = sand.u32 1, %s734_s12  }
 0x1b5   : > { %s440_s4 = scalar_lea.sflag [#allocation6], %s439_s30 }
 0x1b6   : > { %p579_p11 = pnand %p584_p10, %p829_p8 }
 0x1b8   : > { %p580_p12 = pneg %p579_p11 }
 0x1ba   : > { %729 = dma.done.wait (%p580_p12), %s440_s4, 128  }
 0x1bb   : > { %731 = vsyncadd (%p580_p12), %s440_s4, 4294967168  ;;  %s17_s17 = sadd.s32 1, %s754_s17   ;;  %s913_s12 = smov %s738_s13 }
 0x1bc   : > { %p14_p13 = scmp.ge.s32.totalorder %s17_s17, 4   ;;  %s914_s13 = smov %s742_s14 }
 0x1bd   : > { %s915_s14 = smov %s835_s25  ;;  %s916_s15 = smov %s750_s16 }
 0x1be   : > { %s917_s16 = smov %s919_s20  ;;  %16 = sbr.rel (!%p14_p13) target bundleno = 5 (0x5), region = 81 }
 0x1c3   :  { %446 = vsyncpa [#allocation5], 1 }
 0x1c4   :  { %448 = vsyncpa [#allocation5 + $0x1], 1 }
 0x1c5   :  { %449 = vsyncpa [#allocation6], 1 }
 0x1c6   :  { %451 = vsyncpa [#allocation6 + $0x1], 1 }

</bundles_post_ra>
